<compile_context>
chip_gen: v5e
topology: v5e:2x2
jax: 0.10.0
libtpu: 0.0.40
codegen_flags: <defaults>
</compile_context>

<pallas_src>
import jax
import jax.numpy as jnp
from jax.experimental import pallas as pl
from jax.experimental.pallas import tpu as pltpu

H1, H2, H3 = 128, 64, 32


def _mlp_softmax_kernel(x_ref, w1_ref, b1_ref, w2_ref, b2_ref,
                        w3_ref, b3_ref, w4_ref, b4_ref, o_ref):
    x = x_ref[...]

    # Layer 1: Linear(in_features, 128) + Tanh   (MXU matmul + EUP tanh)
    h = jnp.tanh(jnp.dot(x, w1_ref[...], preferred_element_type=jnp.float32)
                 + b1_ref[...])
    # Layer 2: Linear(128, 64) + Tanh
    h = jnp.tanh(jnp.dot(h, w2_ref[...], preferred_element_type=jnp.float32)
                 + b2_ref[...])
    # Layer 3: Linear(64, 32) + Tanh
    h = jnp.tanh(jnp.dot(h, w3_ref[...], preferred_element_type=jnp.float32)
                 + b3_ref[...])
    # Layer 4: Linear(32, out_features)
    logits = (jnp.dot(h, w4_ref[...], preferred_element_type=jnp.float32)
              + b4_ref[...])

    # softmax over dim=1 (last axis), numerically stable.
    # Exact reciprocal kept so results stay within 1e-5 of the f32 reference
    # (approx=True vrcp would be a free EUP win but costs ~1e-4 rel. error).
    m = jnp.max(logits, axis=-1, keepdims=True)
    e = jnp.exp(logits - m)
    denom = jnp.sum(e, axis=-1, keepdims=True)
    o_ref[...] = (e * pl.reciprocal(denom, approx=False)).astype(o_ref.dtype)


def _round_up(n, m):
    return ((n + m - 1) // m) * m


def old_model_forward(x, params, *, block_b=512):
    """x: (B, in_features) float32 -> (B, out_features) float32."""
    w1, b1, w2, b2, w3, b3, w4, b4 = params
    B, in_features = x.shape
    out_features = w4.shape[1]

    # Batch tile: multiple of 8, capped at block_b, never bigger than needed.
    TB = min(block_b, _round_up(B, 8))
    Bp = _round_up(B, TB)
    if Bp != B:
        x = jnp.pad(x, ((0, Bp - B), (0, 0)))  # padded rows are discarded below

    # Weights/biases: constant block index -> fetched once, resident across steps.
    resident = lambda shape: pl.BlockSpec(shape, lambda i: (0, 0))

    out = pl.pallas_call(
        _mlp_softmax_kernel,
        out_shape=jax.ShapeDtypeStruct((Bp, out_features), jnp.float32),
        grid=(Bp // TB,),
        in_specs=[
            pl.BlockSpec((TB, in_features), lambda i: (i, 0)),
            resident(w1.shape), resident(b1.shape),
            resident(w2.shape), resident(b2.shape),
            resident(w3.shape), resident(b3.shape),
            resident(w4.shape), resident(b4.shape),
        ],
        out_specs=pl.BlockSpec((TB, out_features), lambda i: (i, 0)),
        compiler_params=pltpu.CompilerParams(
            dimension_semantics=("parallel",)),  # megacore sharding on v7x
    )(x, w1, b1, w2, b2, w3, b3, w4, b4)

    if Bp != B:
        out = out[:B]
    return out


def init_params(key, in_features, out_features):
    """Deterministic synthetic init (PyTorch-like uniform bounds), weights as (in, out)."""
    dims = [(in_features, H1), (H1, H2), (H2, H3), (H3, out_features)]
    params = []
    for i, (din, dout) in enumerate(dims):
        kw, kb = jax.random.split(jax.random.fold_in(key, i))
        bound = 1.0 / jnp.sqrt(din)
        w = jax.random.uniform(kw, (din, dout), jnp.float32, -bound, bound)
        b = jax.random.uniform(kb, (1, dout), jnp.float32, -bound, bound)
        params += [w, b]
    return tuple(params)


def reference_forward(x, params):
    w1, b1, w2, b2, w3, b3, w4, b4 = params
    h = jnp.tanh(x @ w1 + b1)
    h = jnp.tanh(h @ w2 + b2)
    h = jnp.tanh(h @ w3 + b3)
    logits = h @ w4 + b4
    return jax.nn.softmax(logits, axis=1).astype(jnp.float32)


if __name__ == "__main__":
    in_features, out_features = 32, 8
    key = jax.random.PRNGKey(0)
    kx, kp = jax.random.split(key)
    params = init_params(kp, in_features, out_features)

    # Small check (single grid step, TB rounds down to B).
    batch = 8
    x = jax.random.normal(kx, (batch, in_features), jnp.float32)
    out = jax.block_until_ready(old_model_forward(x, params))
    ref = reference_forward(x, params)
    assert out.shape == (batch, out_features)
    assert out.dtype == jnp.float32
    assert jnp.allclose(out, ref, atol=1e-5, rtol=1e-5)
    assert jnp.allclose(jnp.sum(out, axis=1), 1.0, atol=1e-5)

    # Multi-block check: B not a multiple of TB exercises the padding path
    # and a grid with >1 iterations (pipelined, weights resident).
    batch2 = 300
    x2 = jax.random.normal(jax.random.fold_in(kx, 1),
                           (batch2, in_features), jnp.float32)
    out2 = jax.block_until_ready(old_model_forward(x2, params, block_b=128))
    ref2 = reference_forward(x2, params)
    assert out2.shape == (batch2, out_features)
    assert jnp.allclose(out2, ref2, atol=1e-5, rtol=1e-5)
    assert jnp.allclose(jnp.sum(out2, axis=1), 1.0, atol=1e-5)

    print("KERNEL_OK")
</pallas_src>

<mosaic_0001>
module attributes {stable_mosaic.version = 11 : i64} {
  func.func @_mlp_softmax_kernel(%arg0: i32, %arg1: memref<8x32xf32, #tpu.memory_space<vmem>>, %arg2: memref<32x128xf32, #tpu.memory_space<vmem>>, %arg3: memref<1x128xf32, #tpu.memory_space<vmem>>, %arg4: memref<128x64xf32, #tpu.memory_space<vmem>>, %arg5: memref<1x64xf32, #tpu.memory_space<vmem>>, %arg6: memref<64x32xf32, #tpu.memory_space<vmem>>, %arg7: memref<1x32xf32, #tpu.memory_space<vmem>>, %arg8: memref<32x8xf32, #tpu.memory_space<vmem>>, %arg9: memref<1x8xf32, #tpu.memory_space<vmem>>, %arg10: memref<8x8xf32, #tpu.memory_space<vmem>>) attributes {dimension_semantics = [#tpu.dimension_semantics<parallel>], iteration_bounds = array<i64: 1>, scalar_prefetch = 0 : i64, scratch_operands = 0 : i64, tpu.core_type = #tpu.core_type<tc>, window_params = [{transform_indices = @transform_0, window_bounds = array<i64: 8, 32>}, {pipeline_mode = #tpu.pipeline_mode<synchronous>, transform_indices = @transform_1, window_bounds = array<i64: 32, 128>}, {pipeline_mode = #tpu.pipeline_mode<synchronous>, transform_indices = @transform_2, window_bounds = array<i64: 1, 128>}, {pipeline_mode = #tpu.pipeline_mode<synchronous>, transform_indices = @transform_3, window_bounds = array<i64: 128, 64>}, {pipeline_mode = #tpu.pipeline_mode<synchronous>, transform_indices = @transform_4, window_bounds = array<i64: 1, 64>}, {pipeline_mode = #tpu.pipeline_mode<synchronous>, transform_indices = @transform_5, window_bounds = array<i64: 64, 32>}, {pipeline_mode = #tpu.pipeline_mode<synchronous>, transform_indices = @transform_6, window_bounds = array<i64: 1, 32>}, {pipeline_mode = #tpu.pipeline_mode<synchronous>, transform_indices = @transform_7, window_bounds = array<i64: 32, 8>}, {pipeline_mode = #tpu.pipeline_mode<synchronous>, transform_indices = @transform_8, window_bounds = array<i64: 1, 8>}, {transform_indices = @transform_9, window_bounds = array<i64: 8, 8>}]} {
    %c0 = arith.constant 0 : index
    %c0_0 = arith.constant 0 : index
    %0 = vector.load %arg1[%c0, %c0_0] : memref<8x32xf32, #tpu.memory_space<vmem>>, vector<8x32xf32>
    %c0_1 = arith.constant 0 : index
    %c0_2 = arith.constant 0 : index
    %1 = vector.load %arg2[%c0_1, %c0_2] : memref<32x128xf32, #tpu.memory_space<vmem>>, vector<32x128xf32>
    %cst = arith.constant dense<0.000000e+00> : vector<8x128xf32>
    %2 = tpu.matmul %0, %1, %cst {dimension_numbers = #tpu.dot_dimension_numbers<[1], [0], [0], [1], [0, 0, 1, 1], [], []>} : vector<8x32xf32>, vector<32x128xf32>, vector<8x128xf32> -> vector<8x128xf32>
    %c0_3 = arith.constant 0 : index
    %c0_4 = arith.constant 0 : index
    %3 = vector.load %arg3[%c0_3, %c0_4] : memref<1x128xf32, #tpu.memory_space<vmem>>, vector<1x128xf32>
    %4 = vector.broadcast %3 : vector<1x128xf32> to vector<8x128xf32>
    %5 = arith.addf %2, %4 : vector<8x128xf32>
    %6 = math.tanh %5 : vector<8x128xf32>
    %c0_5 = arith.constant 0 : index
    %c0_6 = arith.constant 0 : index
    %7 = vector.load %arg4[%c0_5, %c0_6] : memref<128x64xf32, #tpu.memory_space<vmem>>, vector<128x64xf32>
    %cst_7 = arith.constant dense<0.000000e+00> : vector<8x64xf32>
    %8 = tpu.matmul %6, %7, %cst_7 {dimension_numbers = #tpu.dot_dimension_numbers<[1], [0], [0], [1], [0, 0, 1, 1], [], []>} : vector<8x128xf32>, vector<128x64xf32>, vector<8x64xf32> -> vector<8x64xf32>
    %c0_8 = arith.constant 0 : index
    %c0_9 = arith.constant 0 : index
    %9 = vector.load %arg5[%c0_8, %c0_9] : memref<1x64xf32, #tpu.memory_space<vmem>>, vector<1x64xf32>
    %10 = vector.broadcast %9 : vector<1x64xf32> to vector<8x64xf32>
    %11 = arith.addf %8, %10 : vector<8x64xf32>
    %12 = math.tanh %11 : vector<8x64xf32>
    %c0_10 = arith.constant 0 : index
    %c0_11 = arith.constant 0 : index
    %13 = vector.load %arg6[%c0_10, %c0_11] : memref<64x32xf32, #tpu.memory_space<vmem>>, vector<64x32xf32>
    %cst_12 = arith.constant dense<0.000000e+00> : vector<8x32xf32>
    %14 = tpu.matmul %12, %13, %cst_12 {dimension_numbers = #tpu.dot_dimension_numbers<[1], [0], [0], [1], [0, 0, 1, 1], [], []>} : vector<8x64xf32>, vector<64x32xf32>, vector<8x32xf32> -> vector<8x32xf32>
    %c0_13 = arith.constant 0 : index
    %c0_14 = arith.constant 0 : index
    %15 = vector.load %arg7[%c0_13, %c0_14] : memref<1x32xf32, #tpu.memory_space<vmem>>, vector<1x32xf32>
    %16 = vector.broadcast %15 : vector<1x32xf32> to vector<8x32xf32>
    %17 = arith.addf %14, %16 : vector<8x32xf32>
    %18 = math.tanh %17 : vector<8x32xf32>
    %c0_15 = arith.constant 0 : index
    %c0_16 = arith.constant 0 : index
    %19 = vector.load %arg8[%c0_15, %c0_16] : memref<32x8xf32, #tpu.memory_space<vmem>>, vector<32x8xf32>
    %cst_17 = arith.constant dense<0.000000e+00> : vector<8x8xf32>
    %20 = tpu.matmul %18, %19, %cst_17 {dimension_numbers = #tpu.dot_dimension_numbers<[1], [0], [0], [1], [0, 0, 1, 1], [], []>} : vector<8x32xf32>, vector<32x8xf32>, vector<8x8xf32> -> vector<8x8xf32>
    %c0_18 = arith.constant 0 : index
    %c0_19 = arith.constant 0 : index
    %21 = vector.load %arg9[%c0_18, %c0_19] : memref<1x8xf32, #tpu.memory_space<vmem>>, vector<1x8xf32>
    %22 = vector.broadcast %21 : vector<1x8xf32> to vector<8x8xf32>
    %23 = arith.addf %20, %22 : vector<8x8xf32>
    %cst_20 = arith.constant dense<0xFF800000> : vector<8xf32>
    %24 = vector.multi_reduction <maximumf>, %23, %cst_20 [1] : vector<8x8xf32> to vector<8xf32>
    %25 = vector.shape_cast %24 : vector<8xf32> to vector<8x1xf32>
    %26 = vector.broadcast %25 : vector<8x1xf32> to vector<8x8xf32>
    %27 = arith.subf %23, %26 : vector<8x8xf32>
    %28 = math.exp %27 : vector<8x8xf32>
    %cst_21 = arith.constant dense<0.000000e+00> : vector<8xf32>
    %29 = vector.multi_reduction <add>, %28, %cst_21 [1] : vector<8x8xf32> to vector<8xf32>
    %30 = vector.shape_cast %29 : vector<8xf32> to vector<8x1xf32>
    %31 = tpu.reciprocal %30 : vector<8x1xf32> -> vector<8x1xf32>
    %32 = vector.broadcast %31 : vector<8x1xf32> to vector<8x8xf32>
    %33 = arith.mulf %28, %32 : vector<8x8xf32>
    %c0_22 = arith.constant 0 : index
    %c0_23 = arith.constant 0 : index
    %34 = vector.load %arg10[%c0_22, %c0_23] : memref<8x8xf32, #tpu.memory_space<vmem>>, vector<8x8xf32>
    tpu.vector_store %arg10[%c0_22, %c0_23], %33 {strides = array<i32>} : memref<8x8xf32, #tpu.memory_space<vmem>>, vector<8x8xf32>,
    return
  }
  func.func @transform_0(%arg0: i32) -> (i32, i32) {
    %c0_i32 = arith.constant 0 : i32
    %c0_i32_0 = arith.constant 0 : i32
    return %arg0, %c0_i32 : i32, i32
  }
  func.func @transform_1(%arg0: i32) -> (i32, i32) {
    %c0_i32 = arith.constant 0 : i32
    %c0_i32_0 = arith.constant 0 : i32
    %c0_i32_1 = arith.constant 0 : i32
    return %c0_i32, %c0_i32_0 : i32, i32
  }
  func.func @transform_2(%arg0: i32) -> (i32, i32) {
    %c0_i32 = arith.constant 0 : i32
    %c0_i32_0 = arith.constant 0 : i32
    %c0_i32_1 = arith.constant 0 : i32
    return %c0_i32, %c0_i32_0 : i32, i32
  }
  func.func @transform_3(%arg0: i32) -> (i32, i32) {
    %c0_i32 = arith.constant 0 : i32
    %c0_i32_0 = arith.constant 0 : i32
    %c0_i32_1 = arith.constant 0 : i32
    return %c0_i32, %c0_i32_0 : i32, i32
  }
  func.func @transform_4(%arg0: i32) -> (i32, i32) {
    %c0_i32 = arith.constant 0 : i32
    %c0_i32_0 = arith.constant 0 : i32
    %c0_i32_1 = arith.constant 0 : i32
    return %c0_i32, %c0_i32_0 : i32, i32
  }
  func.func @transform_5(%arg0: i32) -> (i32, i32) {
    %c0_i32 = arith.constant 0 : i32
    %c0_i32_0 = arith.constant 0 : i32
    %c0_i32_1 = arith.constant 0 : i32
    return %c0_i32, %c0_i32_0 : i32, i32
  }
  func.func @transform_6(%arg0: i32) -> (i32, i32) {
    %c0_i32 = arith.constant 0 : i32
    %c0_i32_0 = arith.constant 0 : i32
    %c0_i32_1 = arith.constant 0 : i32
    return %c0_i32, %c0_i32_0 : i32, i32
  }
  func.func @transform_7(%arg0: i32) -> (i32, i32) {
    %c0_i32 = arith.constant 0 : i32
    %c0_i32_0 = arith.constant 0 : i32
    %c0_i32_1 = arith.constant 0 : i32
    return %c0_i32, %c0_i32_0 : i32, i32
  }
  func.func @transform_8(%arg0: i32) -> (i32, i32) {
    %c0_i32 = arith.constant 0 : i32
    %c0_i32_0 = arith.constant 0 : i32
    %c0_i32_1 = arith.constant 0 : i32
    return %c0_i32, %c0_i32_0 : i32, i32
  }
  func.func @transform_9(%arg0: i32) -> (i32, i32) {
    %c0_i32 = arith.constant 0 : i32
    %c0_i32_0 = arith.constant 0 : i32
    return %arg0, %c0_i32 : i32, i32
  }
}

</mosaic_0001>

<bundles_post_ra>
// kernel: tpu_custom_call.1
= control target key start
LH: loop header
LB: loop body
LE: loop exit
PB: predicated region body
PF: predicated region fallthrough
CT: control target
= control target key end

     0   :  { %vm42_vm0 = vcmask 261120   ;;  %s432_s0 = inlined_call_operand.vmem [shape: f32[8,32], index: 0, kind: input, shape index: {}]   ;;  %s433_s1 = inlined_call_operand.vmem [shape: f32[32,128], index: 1, kind: input, shape index: {}]   ;;  %s434_s2 = inlined_call_operand.vmem [shape: f32[1,128], index: 2, kind: input, shape index: {}]   ;;  %s435_s3 = inlined_call_operand.vmem [shape: f32[128,64], index: 3, kind: input, shape index: {}]   ;;  %s436_s4 = inlined_call_operand.vmem [shape: f32[1,64], index: 4, kind: input, shape index: {}]   ;;  %s437_s5 = inlined_call_operand.vmem [shape: f32[64,32], index: 5, kind: input, shape index: {}]   ;;  %s438_s6 = inlined_call_operand.vmem [shape: f32[1,32], index: 6, kind: input, shape index: {}]   ;;  %s439_s7 = inlined_call_operand.vmem [shape: f32[32,8], index: 7, kind: input, shape index: {}]   ;;  %s440_s8 = inlined_call_operand.vmem [shape: f32[1,8], index: 8, kind: input, shape index: {}]   ;;  %s441_s9 = inlined_call_operand.hbm [shape: f32[8,8], index: 9, kind: output, shape index: {}]  }
   0x1   :  { %v37_v0 = vld [vmem:[%s433_s1 + $0x18] sm:$0xff]  ;;  %v36_v1 = vld [vmem:[%s433_s1 + $0x10] sm:$0xff]  ;;  %v35_v3 = vld [vmem:[%s433_s1 + $0x8] sm:$0xff] }
   0x2   :  { %58 = vmatpush.msra.mxu0 %v37_v0  ;;  %v82_v2 = vld [vmem:[%s435_s3 + $0x78] sm:$0xff]  ;;  %v81_v4 = vld [vmem:[%s435_s3 + $0x70] sm:$0xff]  ;;  %v80_v5 = vld [vmem:[%s435_s3 + $0x68] sm:$0xff] }
   0x3   :  { %87 = vmatpush.msra.mxu1 %v82_v2  ;;  %v34_v6 = vld [vmem:[%s433_s1] sm:$0xff]  ;;  %v78_v9 = vld [vmem:[%s435_s3 + $0x58] sm:$0xff] }
   0x4   :  { %59 = vmatpush.msra.mxu0 %v36_v1  ;;  %v33_v7 = vld [vmem:[%s432_s0] sm:$0xff] }
   0x5   :  { %88 = vmatpush.msra.mxu1 %v81_v4  ;;  %v79_v8 = vld [vmem:[%s435_s3 + $0x60] sm:$0xff] }
   0x6   :  { %60 = vmatpush.msra.mxu0 %v35_v3 }
   0x7   :  { %89 = vmatpush.msra.mxu1 %v80_v5 }
   0x8   :  { %61 = vmatpush.msra.mxu0 %v34_v6 }
   0x9   :  { %14 = vsyncpa [#allocation3], 0  ;;  %218 = vmatmul.msk.f32.vlgmr.msra.gmra.mxu0 %vm42_vm0, %v33_v7  ;;  %90 = vmatpush.msra.mxu1 %v79_v8  ;;  %v77_v10 = vld [vmem:[%s435_s3 + $0x50] sm:$0xff]  ;;  %v76_v11 = vld [vmem:[%s435_s3 + $0x48] sm:$0xff]  ;;  %vm120_vm1 = vcmask 523264   ;;  %vm176_vm2 = vcmask 64512  }
   0xa   :  { %v75_v12 = vld [vmem:[%s435_s3 + $0x40] sm:$0xff]  ;;  %v74_v13 = vld [vmem:[%s435_s3 + $0x38] sm:$0xff]  ;;  %v73_v14 = vld [vmem:[%s435_s3 + $0x30] sm:$0xff]  ;;  %s209_s11 = sshll.u32 %s441_s9, 4  ;;  %s210_s11 = int_to_ptr.hbm [resolvable:$true] %s209_s11 }
   0xb   :  { %91 = vmatpush.msra.mxu1 %v78_v9  ;;  %v72_v15 = vld [vmem:[%s435_s3 + $0x28] sm:$0xff]  ;;  %v71_v16 = vld [vmem:[%s435_s3 + $0x20] sm:$0xff]  ;;  %v70_v17 = vld [vmem:[%s435_s3 + $0x18] sm:$0xff] }
   0xc   :  { %v69_v18 = vld [vmem:[%s435_s3 + $0x10] sm:$0xff]  ;;  %v68_v19 = vld [vmem:[%s435_s3 + $0x8] sm:$0xff]  ;;  %v67_v20 = vld [vmem:[%s435_s3] sm:$0xff] }
   0xd   :  { %92 = vmatpush.msra.mxu1 %v77_v10  ;;  %v115_v21 = vld [vmem:[%s437_s5 + $0x38] sm:$0xff]  ;;  %v114_v22 = vld [vmem:[%s437_s5 + $0x30] sm:$0xff]  ;;  %v113_v23 = vld [vmem:[%s437_s5 + $0x28] sm:$0xff] }
   0xe   :  { %132 = vmatpush.msra.mxu2 %v115_v21  ;;  %v222_v24 = vld [vmem:[%s434_s2] ss:$0 sm:$0xff]  ;;  %v111_v29 = vld [vmem:[%s437_s5 + $0x18] sm:$0xff]  ;;  %v110_v30 = vld [vmem:[%s437_s5 + $0x10] sm:$0xff] }
   0xf   :  { %93 = vmatpush.msra.mxu1 %v76_v11  ;;  %v112_v28 = vld [vmem:[%s437_s5 + $0x20] sm:$0xff]  ;;  %v109_v31 = vld [vmem:[%s437_s5 + $0x8] sm:$0xff]  ;;  %v148_v37 = vld [vmem:[%s439_s7 + $0x18] sm:$0xff] }
  0x10   :  { %133 = vmatpush.msra.mxu2 %v114_v22  ;;  %v108_v32 = vld [vmem:[%s437_s5] sm:$0xff]  ;;  %168 = vmatpush.msra.mxu3 %v148_v37  ;;  %v147_v38 = vld [vmem:[%s439_s7 + $0x10] sm:$0xff]  ;;  %v146_v39 = vld [vmem:[%s439_s7 + $0x8] sm:$0xff] }
  0x11   :  { %94 = vmatpush.msra.mxu1 %v75_v12  ;;  %v223_v33 = vld [vmem:[%s436_s4] ss:$0 sm:$0xff] }
  0x12   :  { %134 = vmatpush.msra.mxu2 %v113_v23  ;;  %169 = vmatpush.msra.mxu3 %v147_v38  ;;  %v145_v40 = vld [vmem:[%s439_s7] sm:$0xff] }
  0x13   :  { %95 = vmatpush.msra.mxu1 %v74_v13  ;;  %v224_v41 = vld [vmem:[%s438_s6] ss:$0 sm:$0xff]  ;;  %s262_s6 = smov [#allocation2]  }
  0x14   :  { %135 = vmatpush.msra.mxu2 %v112_v28  ;;  %170 = vmatpush.msra.mxu3 %v146_v39  ;;  %v225_v45 = vld [vmem:[%s440_s8] ss:$0 sm:$0xff]  ;;  %s207_s7 = sshll.u32 %s262_s6, 4  ;;  %s208_s7 = int_to_ptr.vmem [resolvable:$true] %s207_s7 }
  0x15   :  { %96 = vmatpush.msra.mxu1 %v73_v14 }
  0x16   :  { %136 = vmatpush.msra.mxu2 %v111_v29  ;;  %171 = vmatpush.msra.mxu3 %v145_v40 }
  0x17   :  { %97 = vmatpush.msra.mxu1 %v72_v15 }
  0x18   :  { %137 = vmatpush.msra.mxu2 %v110_v30 }
  0x19   :  { %98 = vmatpush.msra.mxu1 %v71_v16 }
  0x1a   :  { %138 = vmatpush.msra.mxu2 %v109_v31 }
  0x1b   :  { %99 = vmatpush.msra.mxu1 %v70_v17 }
  0x1c   :  { %139 = vmatpush.msra.mxu2 %v108_v32 }
  0x1d   :  { %100 = vmatpush.msra.mxu1 %v69_v18 }
  0x1f   :  { %101 = vmatpush.msra.mxu1 %v68_v19 }
  0x21   :  { %102 = vmatpush.msra.mxu1 %v67_v20 }
  0x86   :  { %v63_v25 = vpop.f32.mrf.mxu0 }
  0x87   :  { %v64_v26 = vadd.f32 %v222_v24, %v63_v25 }
  0x89   :  { %226 = vtanh.f32 %v64_v26 }
  0x8f   :  { %v227_v27 = vpop.eup %226 }
  0x90   :  { %103 = vmatmul.f32.vlgmr.msra.gmra.mxu1 %v227_v27 }
 0x10d   :  { %v104_v34 = vpop.f32.mrf.mxu1 }
 0x10e   :  { %v105_v35 = vadd.f32 %v223_v33, %v104_v34 }
 0x110   :  { %228 = vtanh.f32 %v105_v35 }
 0x116   :  { %v229_v36 = vpop.eup %228 }
 0x117   :  { %219 = vmatmul.msk.f32.vlgmr.msra.gmra.mxu2 %vm120_vm1, %v229_v36 }
 0x19a   :  { %v141_v42 = vpop.f32.mrf.mxu2 }
 0x19b   :  { %v142_v43 = vadd.f32 %v224_v41, %v141_v42 }
 0x19d   :  { %230 = vtanh.f32 %v142_v43 }
 0x1a3   :  { %v231_v44 = vpop.eup %230 }
 0x1a4   :  { %220 = vmatmul.msk.f32.vlgmr.msra.gmra.mxu3 %vm42_vm0, %v231_v44 }
 0x227   :  { %v173_v46 = vpop.f32.mrf.mxu3 }
 0x228   :  { %v174_v47 = vadd.f32 %v225_v45, %v173_v46 }
 0x22a   :  { %v177_v48 = vsel %vm176_vm2, %v174_v47, -inf }
 0x22b   :  { %178 = vmax.xlane.f32.xlu0 %v177_v48 }
 0x29e   :  { %v179_v49 = vpop.xlane.xlu0 %178 }
 0x29f   :  { %v180_v50 = vsub.f32 %v174_v47, %v179_v49 }
 0x2a1   :  { %v181_v51 = vmul.f32 1.442695, %v180_v50 }
 0x2a3   :  { %232 = vpow2.f32 %v181_v51 }
 0x2a9   :  { %v233_v52 = vpop.eup %232 }
 0x2aa   :  { %v183_v53 = vsel %vm176_vm2, %v233_v52, 0.0 }
 0x2ab   :  { %184 = vadd.xlane.f32.xlu0 %v183_v53 }
 0x31e   :  { %v185_v54 = vpop.xlane.xlu0 %184 }
 0x31f   :  { %234 = vrcp.f32 %v185_v54  ;;  %v197_v58 = vand.u32 2147483648, %v185_v54  ;;  %v195_v60 = vand.u32 2147483647, %v185_v54  ;;  %vm191_vm4 = vweird.f32 %v185_v54 }
 0x321   :  { %v198_v62 = vor.u32 1.1754944e-38, %v197_v58  ;;  %vm196_vm6 = vcmp.eq.f32.partialorder %v195_v60, 8.507059e+37 }
 0x325   :  { %v235_v55 = vpop.eup %234 }
 0x326   :  { %v187_v56 = vmul.f32 %v235_v55, %v185_v54  ;;  %vm192_vm3 = vweird.f32 %v235_v55 }
 0x327   :  { %vm193_vm5 = vmor %vm191_vm4, %vm192_vm3 }
 0x328   :  { %v188_v57 = vsub.f32 1.0, %v187_v56 }
 0x32a   :  { %v189_v59 = vmul.f32 %v235_v55, %v188_v57 }
 0x32c   :  { %v190_v61 = vadd.f32 %v235_v55, %v189_v59 }
 0x32e   :  { %v194_v63 = vsel %vm193_vm5, %v235_v55, %v190_v61 }
 0x32f   :  { %v199_v0 = vsel %vm196_vm6, %v198_v62, %v194_v63 }
 0x330   :  { %v200_v1 = vmul.f32 %v233_v52, %v199_v0 }
 0x332   :  { %201 = vst.msk [vmem:[#allocation2] sm:$0xff] %vm176_vm2, %v200_v1 }
 0x333   :  { %212 = dma.vmem_to_hbm [thread:$0]  %s208_s7, 128, %s210_s11, [#allocation3]  }
 0x334   :  { %260 = dma.done.wait [#allocation3], 128  }
 0x335   :  { %261 = vsyncadd [#allocation3], 4294967168 }
 0x336   :  { %217 = vsyncpa [#allocation3], 1 }

</bundles_post_ra>
